<compile_context>
chip_gen: v6e
topology: v6e:2x2x1
jax: 0.10.0
libtpu: 0.0.40
codegen_flags: <defaults>
</compile_context>

<pallas_src>
import numpy as np

import jax
import jax.numpy as jnp
from jax.experimental import pallas as pl
from jax.experimental.pallas import tpu as pltpu


def _product_kernel(x_ref, m_ref, o_ref):
    # One MXU matmul against the constant 0/1 selection matrix produces the
    # lane-dense flat output tile with zero lane shuffles or relayouts.
    acc = jnp.dot(
        x_ref[...], m_ref[...],
        precision=jax.lax.Precision.HIGHEST,
        preferred_element_type=jnp.float32,
    )
    o_ref[...] = acc.astype(o_ref.dtype)


def _selection_matrix(num_partitions, in_nodes, dtype):
    """0/1 matrix M (2*P*N, P*N*N): column p*N*N + i*N + j has ones at rows
    p*2N + i (even region, node i) and p*2N + N + j (odd region, node j)."""
    P, N = num_partitions, in_nodes
    rows = 2 * P * N
    cols = P * N * N
    k = np.arange(rows)[:, None]            # (rows, 1)
    c = np.arange(cols)[None, :]            # (1, cols)
    p = c // (N * N)
    i = (c % (N * N)) // N
    j = c % N
    sel = (k == p * 2 * N + i) | (k == p * 2 * N + N + j)
    return jnp.asarray(sel, dtype=dtype)


def _round_up(x, m):
    return ((x + m - 1) // m) * m


def _pick_batch_tile(batch, out_row_bytes, sublane):
    """~2 MiB output tile (safe under v5e's 16 MiB default scoped VMEM when
    double-buffered), >= 4 grid steps when possible (>= 2 per TensorCore on
    v7x so prefetch/writeback overlap), TB aligned to sublane packing."""
    if batch <= sublane:
        return batch                        # block == full dim: always legal
    tb = max(sublane, (2 * 1024 * 1024) // max(out_row_bytes, 1))
    tb = min(tb, -(-batch // 4))            # keep >= 4 grid steps when possible
    tb = max(sublane, (tb // sublane) * sublane)
    return min(tb, batch)


def product_layer_forward(x, in_regions, in_nodes, *, block_batch=None):
    """Pallas implementation of ProductLayer.forward.

    x: (B, in_regions, in_nodes)
    returns: (B, in_regions // 2, in_nodes ** 2)
    """
    B, R, N = x.shape
    assert R == in_regions and N == in_nodes and R % 2 == 0
    P = R // 2
    out_nodes = N * N
    out_flat = P * out_nodes
    in_flat = R * N

    itemsize = x.dtype.itemsize
    sublane = max(8, 32 // itemsize)        # 8 f32 / 16 bf16 / 32 int8-fp8

    # Free contiguous reshape: region 2p+e, node n lands at lane p*2N + e*N + n.
    x2d = x.reshape(B, in_flat)
    m_sel = _selection_matrix(P, N, x.dtype)

    if block_batch is None:
        block_batch = _pick_batch_tile(B, out_flat * itemsize, sublane)
    TB = int(block_batch)
    grid = (pl.cdiv(B, TB),)

    # Explicit VMEM budget from the actual padded tiles (lane dim -> x128,
    # sublane dim -> dtype packing), double-buffered, plus headroom.
    tb_pad = _round_up(TB, sublane)
    in_tile = tb_pad * _round_up(in_flat, 128) * itemsize
    out_tile = tb_pad * _round_up(out_flat, 128) * itemsize
    m_tile = _round_up(in_flat, sublane) * _round_up(out_flat, 128) * itemsize
    vmem_bytes = 2 * (in_tile + out_tile + m_tile) + (4 << 20)

    out_2d = pl.pallas_call(
        _product_kernel,
        out_shape=jax.ShapeDtypeStruct((B, out_flat), x.dtype),
        grid_spec=pltpu.PrefetchScalarGridSpec(
            num_scalar_prefetch=0,
            grid=grid,
            in_specs=[
                pl.BlockSpec((TB, in_flat), lambda b: (b, 0)),
                # Constant block index -> selection matrix stays resident.
                pl.BlockSpec((in_flat, out_flat), lambda b: (0, 0)),
            ],
            out_specs=pl.BlockSpec((TB, out_flat), lambda b: (b, 0)),
        ),
        compiler_params=pltpu.CompilerParams(
            dimension_semantics=("parallel",),
            vmem_limit_bytes=int(vmem_bytes),
        ),
    )(x2d, m_sel)

    # Free reshape back to the PyTorch output shape.
    return out_2d.reshape(B, P, out_nodes)


def product_layer_reference(x, in_regions, in_nodes):
    """Pure-JAX reference mirroring the PyTorch code exactly."""
    out_partitions = in_regions // 2
    out_nodes = in_nodes ** 2
    x1 = x[:, 0::2, :][:, :, :, None]    # (B, P, N, 1) (mask == True regions)
    x2 = x[:, 1::2, :][:, :, None, :]    # (B, P, 1, N) (mask == False regions)
    out = x1 + x2                        # (B, P, N, N)
    return out.reshape(-1, out_partitions, out_nodes)


if __name__ == "__main__":
    in_regions, in_nodes = 8, 8
    key = jax.random.PRNGKey(0)

    # Small shape consistent with the module (batch=2, in_regions=8, in_nodes=8),
    # plus larger batches exercising multi-step grids and a partial final tile.
    for batch in (2, 64, 37):
        key, sub = jax.random.split(key)
        # Log-probability-like inputs (negative values), deterministic.
        x = -jnp.abs(jax.random.normal(sub, (batch, in_regions, in_nodes),
                                       dtype=jnp.float32))
        out = jax.block_until_ready(
            product_layer_forward(x, in_regions, in_nodes))
        ref = product_layer_reference(x, in_regions, in_nodes)
        assert out.shape == (batch, in_regions // 2, in_nodes ** 2), out.shape
        # f32 HIGHEST-precision matmul with a 0/1 matrix is exact up to a few
        # ulps of accumulation ordering.
        assert jnp.allclose(out, ref, atol=1e-6, rtol=1e-5), \
            f"mismatch vs reference (batch={batch})"

    print("KERNEL_OK")
</pallas_src>

<mosaic_0001>
module attributes {stable_mosaic.version = 11 : i64} {
  func.func @_product_kernel(%arg0: i32, %arg1: memref<2x64xf32, #tpu.memory_space<vmem>>, %arg2: memref<64x256xf32, #tpu.memory_space<vmem>>, %arg3: memref<2x256xf32, #tpu.memory_space<vmem>>) attributes {dimension_semantics = [#tpu.dimension_semantics<parallel>], iteration_bounds = array<i64: 1>, scalar_prefetch = 0 : i64, scratch_operands = 0 : i64, tpu.core_type = #tpu.core_type<tc>, window_params = [{transform_indices = @transform_0, window_bounds = array<i64: 2, 64>}, {pipeline_mode = #tpu.pipeline_mode<synchronous>, transform_indices = @transform_1, window_bounds = array<i64: 64, 256>}, {transform_indices = @transform_2, window_bounds = array<i64: 2, 256>}]} {
    %c0 = arith.constant 0 : index
    %c0_0 = arith.constant 0 : index
    %0 = vector.load %arg1[%c0, %c0_0] : memref<2x64xf32, #tpu.memory_space<vmem>>, vector<2x64xf32>
    %c0_1 = arith.constant 0 : index
    %c0_2 = arith.constant 0 : index
    %1 = vector.load %arg2[%c0_1, %c0_2] : memref<64x256xf32, #tpu.memory_space<vmem>>, vector<64x256xf32>
    %cst = arith.constant dense<0.000000e+00> : vector<2x256xf32>
    %2 = tpu.matmul %0, %1, %cst {dimension_numbers = #tpu.dot_dimension_numbers<[1], [0], [0], [1], [0, 0, 1, 1], [], []>, precision = #tpu.contract_precision<fp32>} : vector<2x64xf32>, vector<64x256xf32>, vector<2x256xf32> -> vector<2x256xf32>
    %c0_3 = arith.constant 0 : index
    %c0_4 = arith.constant 0 : index
    %3 = vector.load %arg3[%c0_3, %c0_4] : memref<2x256xf32, #tpu.memory_space<vmem>>, vector<2x256xf32>
    tpu.vector_store %arg3[%c0_3, %c0_4], %2 {strides = array<i32>} : memref<2x256xf32, #tpu.memory_space<vmem>>, vector<2x256xf32>,
    return
  }
  func.func @transform_0(%arg0: i32) -> (i32, i32) {
    %c0_i32 = arith.constant 0 : i32
    %c0_i32_0 = arith.constant 0 : i32
    return %arg0, %c0_i32 : i32, i32
  }
  func.func @transform_1(%arg0: i32) -> (i32, i32) {
    %c0_i32 = arith.constant 0 : i32
    %c0_i32_0 = arith.constant 0 : i32
    %c0_i32_1 = arith.constant 0 : i32
    return %c0_i32, %c0_i32_0 : i32, i32
  }
  func.func @transform_2(%arg0: i32) -> (i32, i32) {
    %c0_i32 = arith.constant 0 : i32
    %c0_i32_0 = arith.constant 0 : i32
    return %arg0, %c0_i32 : i32, i32
  }
}

</mosaic_0001>

<bundles_post_ra>
// kernel: tpu_custom_call.1
= control target key start
LH: loop header
LB: loop body
LE: loop exit
PB: predicated region body
PF: predicated region fallthrough
CT: control target
= control target key end

     0   :  { %7 = vsyncpa [#allocation3], 0  ;;  %s1123_s0 = inlined_call_operand.hbm [shape: f32[2,64], index: 0, kind: input, shape index: {}]   ;;  %s1124_s1 = inlined_call_operand.hbm [shape: f32[64,256], index: 1, kind: input, shape index: {}]   ;;  %s1125_s2 = inlined_call_operand.hbm [shape: f32[2,256], index: 2, kind: output, shape index: {}]  }
   0x1   :  { %8 = vsyncpa [#allocation6], 0 }
   0x2   :  { %9 = vsyncpa [#allocation4], 0  ;;  %s807_s9 = smov [#allocation2]   ;;  %s808_s11 = smov [#allocation5]  }
   0x3   :  { %s16_s10 = sshll.u32 %s807_s9, 4  ;;  %s25_s12 = sshll.u32 %s808_s11, 4  ;;  %s17_s10 = int_to_ptr.vmem [resolvable:$true] %s16_s10  ;;  %s26_s12 = int_to_ptr.vmem [resolvable:$true] %s25_s12 }
   0x4   :  { %s749_s13 = scalar_lea.vmem %s17_s10, 32  ;;  %p754_p1 = scmp.lt.s32.totalorder %s17_s10, %s17_s10 }
   0x5   :  { %p750_p0 = scmp.ne.s32.totalorder %s17_s10, %s749_s13  ;;  %p755_p2 = scmp.lt.s32.totalorder %s749_s13, %s749_s13 }
   0x7   :  { %p756_p3 = por %p755_p2, %p754_p1 }
   0x9   :  { %p757_p4 = pnand %p756_p3, %p750_p0 }
   0xb   :  { %760 = shalt.err (!%p757_p4)
}
   0xc   :  { %19 = dma.hbm_to_vmem [thread:$0]  %s1123_s0, 32, %s17_s10, [#allocation3]  }
   0xd   :  { %s769_s16 = scalar_lea.vmem %s26_s12, 2048  ;;  %p774_p6 = scmp.lt.s32.totalorder %s26_s12, %s26_s12 }
   0xe   :  { %p770_p5 = scmp.ne.s32.totalorder %s26_s12, %s769_s16  ;;  %p775_p7 = scmp.lt.s32.totalorder %s769_s16, %s769_s16 }
  0x10   :  { %p776_p8 = por %p775_p7, %p774_p6 }
  0x12   :  { %p777_p9 = pnand %p776_p8, %p770_p5 }
  0x14   :  { %780 = shalt.err (!%p777_p9)
}
  0x15   :  { %s809_s17 = smov 256   ;;  %s810_s18 = smov 16  }
  0x16   :  { %31 = dma.hbm_to_vmem [thread:$0]  %s1124_s1, 2048, %s26_s12, [#allocation6], %s809_s17, %s809_s17, %s810_s18  }
  0x17   :  { %801 = dma.done.wait [#allocation3], 32  }
  0x18   :  { %802 = vsyncadd [#allocation3], 4294967264 }
  0x19   :  { %803 = dma.done.wait [#allocation6], 2048  }
  0x1a   :  { %804 = vsyncadd [#allocation6], 4294965248  ;;  %v811_v0 = vmov 0.0   ;;  %v54_v1 = vld [vmem:[#allocation5 + $0x78] sm:$0xff]  ;;  %v53_v2 = vld [vmem:[#allocation5 + $0x70] sm:$0xff]  ;;  %vm55_vm0 = vcmask 523264  }
  0x1b   :  { %139 = vmatprep.mubr.f32.mxu0 %v811_v0  ;;  %295 = vmatprep.mubr.f32.mxu1 %v811_v0  ;;  %v52_v3 = vld [vmem:[#allocation5 + $0x68] sm:$0xff]  ;;  %v836_v4 = vand.u32 4294901760, %v54_v1  ;;  %v838_v5 = vand.u32 4294901760, %v53_v2  ;;  %v51_v7 = vld [vmem:[#allocation5 + $0x60] sm:$0xff]  ;;  %v50_v8 = vld [vmem:[#allocation5 + $0x58] sm:$0xff]  ;;  %s812_s0 = smov [#allocation7]  }
  0x1c   :  { %v840_v6 = vand.u32 4294901760, %v52_v3  ;;  %v49_v9 = vld [vmem:[#allocation5 + $0x50] sm:$0xff]  ;;  %v842_v10 = vand.u32 4294901760, %v51_v7  ;;  %v844_v11 = vand.u32 4294901760, %v50_v8  ;;  %v48_v13 = vld [vmem:[#allocation5 + $0x48] sm:$0xff]  ;;  %v47_v14 = vld [vmem:[#allocation5 + $0x40] sm:$0xff] }
  0x1d   :  { %v846_v12 = vand.u32 4294901760, %v49_v9  ;;  %v46_v15 = vld [vmem:[#allocation5 + $0x38] sm:$0xff]  ;;  %76 = vmatprep.subr.mxu0 %v836_v4  ;;  %v849_v16 = vand.u32 4294901760, %v48_v13  ;;  %v851_v17 = vand.u32 4294901760, %v47_v14  ;;  %v856_v19 = vsub.f32 %v54_v1, %v836_v4  ;;  %v45_v20 = vld [vmem:[#allocation5 + $0x30] sm:$0xff]  ;;  %v858_v21 = vld [vmem:[#allocation5 + $0x28] sm:$0xff] }
  0x1e   :  { %v853_v18 = vand.u32 4294901760, %v46_v15  ;;  %v860_v22 = vld [vmem:[#allocation5 + $0x20] sm:$0xff]  ;;  %78 = vmatpush1.msra.mxu0 %v838_v5  ;;  %v863_v23 = vand.u32 4294901760, %v45_v20  ;;  %v866_v24 = vsub.f32 %v53_v2, %v838_v5  ;;  %v869_v25 = vand.u32 4294901760, %v858_v21  ;;  %v874_v27 = vld [vmem:[#allocation5 + $0x18] sm:$0xff]  ;;  %v876_v28 = vld [vmem:[#allocation5 + $0x10] sm:$0xff] }
  0x1f   :  { %v872_v26 = vsub.f32 %v52_v3, %v840_v6  ;;  %v878_v29 = vld [vmem:[#allocation5 + $0x8] sm:$0xff]  ;;  %80 = vmatprep.subr.mxu0 %v840_v6  ;;  %v169_v30 = vand.u32 4294901760, %v856_v19  ;;  %v883_v31 = vand.u32 4294901760, %v860_v22  ;;  %v886_v32 = vsub.f32 %v51_v7, %v842_v10  ;;  %v900_v38 = vld [vmem:[#allocation5] sm:$0xff]  ;;  %v38_v51 = vld [vmem:[#allocation2] sm:$0x3] }
  0x20   :  { %v889_v33 = vand.u32 4294901760, %v874_v27  ;;  %82 = vmatpush1.msra.mxu0 %v842_v10  ;;  %v175_v34 = vand.u32 4294901760, %v866_v24  ;;  %v895_v36 = vsub.f32 %v50_v8, %v844_v11  ;;  %v898_v37 = vand.u32 4294901760, %v876_v28  ;;  %s724_s1 = sshll.u32 %s812_s0, 4  ;;  %s725_s1 = int_to_ptr.vmem [resolvable:$true] %s724_s1 }
  0x21   :  { %v181_v35 = vand.u32 4294901760, %v872_v26  ;;  %84 = vmatprep.subr.mxu0 %v844_v11  ;;  %v170_v39 = vsub.f32 %v856_v19, %v169_v30  ;;  %v187_v40 = vand.u32 4294901760, %v886_v32  ;;  %v908_v41 = vsub.f32 %v49_v9, %v846_v12  ;;  %s781_s21 = scalar_lea.vmem %s725_s1, 64  ;;  %p786_p11 = scmp.lt.s32.totalorder %s725_s1, %s725_s1 }
  0x22   :  { %v911_v42 = vand.u32 4294901760, %v878_v29  ;;  %86 = vmatpush1.msra.mxu0 %v846_v12  ;;  %v176_v43 = vsub.f32 %v866_v24, %v175_v34  ;;  %v193_v45 = vand.u32 4294901760, %v895_v36  ;;  %v922_v46 = vsub.f32 %v48_v13, %v849_v16  ;;  %p782_p10 = scmp.ne.s32.totalorder %s725_s1, %s781_s21  ;;  %p787_p12 = scmp.lt.s32.totalorder %s781_s21, %s781_s21 }
  0x23   :  { %v182_v44 = vsub.f32 %v872_v26, %v181_v35  ;;  %88 = vmatprep.subr.mxu0 %v849_v16  ;;  %v171_v47 = vand.u32 4294901760, %v170_v39  ;;  %v188_v48 = vsub.f32 %v886_v32, %v187_v40  ;;  %v199_v49 = vand.u32 4294901760, %v908_v41 }
  0x24   :  { %v930_v50 = vand.u32 4294901760, %v900_v38  ;;  %90 = vmatpush1.msra.mxu0 %v851_v17  ;;  %v177_v52 = vand.u32 4294901760, %v176_v43  ;;  %v194_v54 = vsub.f32 %v895_v36, %v193_v45  ;;  %v205_v55 = vand.u32 4294901760, %v922_v46  ;;  %p788_p13 = por %p787_p12, %p786_p11 }
  0x25   :  { %v183_v53 = vand.u32 4294901760, %v182_v44  ;;  %92 = vmatprep.subr.mxu0 %v853_v18  ;;  %172 = vmatprep.subr.mxu1 %v171_v47  ;;  %v189_v56 = vand.u32 4294901760, %v188_v48  ;;  %v200_v57 = vsub.f32 %v908_v41, %v199_v49  ;;  %v942_v58 = vsub.f32 %v47_v14, %v851_v17 }
  0x26   :  { %v945_v59 = vsub.f32 %v46_v15, %v853_v18  ;;  %94 = vmatpush1.msra.mxu0 %v863_v23  ;;  %178 = vmatpush1.msra.mxu1 %v177_v52  ;;  %v195_v60 = vand.u32 4294901760, %v194_v54  ;;  %v206_v61 = vsub.f32 %v922_v46, %v205_v55  ;;  %v57_v62 = vsel %vm55_vm0, %v38_v51, 0  ;;  %p789_p0 = pnand %p788_p13, %p782_p10 }
  0x27   :  { %v953_v63 = vsub.f32 %v45_v20, %v863_v23  ;;  %96 = vmatprep.subr.mxu0 %v869_v25  ;;  %184 = vmatprep.subr.mxu1 %v183_v53  ;;  %v201_v1 = vand.u32 4294901760, %v200_v57  ;;  %v211_v2 = vand.u32 4294901760, %v942_v58  ;;  %v958_v7 = vand.u32 4294901760, %v57_v62 }
  0x28   :  { %v217_v3 = vand.u32 4294901760, %v945_v59  ;;  %98 = vmatpush1.msra.mxu0 %v883_v31  ;;  %190 = vmatpush1.msra.mxu1 %v189_v56  ;;  %v207_v8 = vand.u32 4294901760, %v206_v61  ;;  %v964_v13 = vsub.f32 %v858_v21, %v869_v25  ;;  %v968_v14 = vsub.f32 %v860_v22, %v883_v31 }
  0x29   :  { %v223_v9 = vand.u32 4294901760, %v953_v63  ;;  %100 = vmatprep.subr.mxu0 %v889_v33  ;;  %196 = vmatprep.subr.mxu1 %v195_v60  ;;  %v212_v15 = vsub.f32 %v942_v58, %v211_v2  ;;  %v978_v39 = vsub.f32 %v57_v62, %v958_v7  ;;  %v988_v44 = vsub.f32 %v874_v27, %v889_v33 }
  0x2a   :  { %v218_v20 = vsub.f32 %v945_v59, %v217_v3  ;;  %102 = vmatpush1.msra.mxu0 %v898_v37  ;;  %202 = vmatpush1.msra.mxu1 %v201_v1  ;;  %v229_v22 = vand.u32 4294901760, %v964_v13  ;;  %v235_v43 = vand.u32 4294901760, %v968_v14  ;;  %v994_v52 = vsub.f32 %v876_v28, %v898_v37 }
  0x2b   :  { %v224_v21 = vsub.f32 %v953_v63, %v223_v9  ;;  %104 = vmatprep.subr.mxu0 %v911_v42  ;;  %208 = vmatprep.subr.mxu1 %v207_v8  ;;  %v213_v47 = vand.u32 4294901760, %v212_v15  ;;  %v142_v51 = vand.u32 4294901760, %v978_v39  ;;  %v241_v56 = vand.u32 4294901760, %v988_v44 }
  0x2c   :  { %v219_v48 = vand.u32 4294901760, %v218_v20  ;;  %106 = vmatpush1.msra.mxu0 %v930_v50  ;;  %v230_v54 = vsub.f32 %v964_v13, %v229_v22  ;;  %v236_v27 = vsub.f32 %v968_v14, %v235_v43  ;;  %v247_v57 = vand.u32 4294901760, %v994_v52 }
  0x2d   :  { %v225_v53 = vand.u32 4294901760, %v224_v21  ;;  %214 = vmatpush1.msra.mxu1 %v213_v47  ;;  %321 = vmatprep.subr.mxu0 %v856_v19  ;;  %v143_v28 = vsub.f32 %v978_v39, %v142_v51  ;;  %v1011_v60 = vsub.f32 %v878_v29, %v911_v42  ;;  %v1015_v61 = vsub.f32 %v900_v38, %v930_v50 }
  0x2e   :  { %220 = vmatprep.subr.mxu1 %v219_v48  ;;  %v231_v62 = vand.u32 4294901760, %v230_v54  ;;  %v237_v1 = vand.u32 4294901760, %v236_v27  ;;  %v242_v8 = vsub.f32 %v988_v44, %v241_v56  ;;  %v248_v20 = vsub.f32 %v994_v52, %v247_v57 }
  0x2f   :  { %v144_v15 = vand.u32 4294901760, %v143_v28  ;;  %226 = vmatpush1.msra.mxu1 %v225_v53  ;;  %v253_v29 = vand.u32 4294901760, %v1011_v60  ;;  %v259_v21 = vand.u32 4294901760, %v1015_v61 }
  0x30   :  { %232 = vmatprep.subr.mxu1 %v231_v62  ;;  %v243_v38 = vand.u32 4294901760, %v242_v8  ;;  %v249_v47 = vand.u32 4294901760, %v248_v20 }
  0x31   :  { %145 = vmatmul.mubr.f32.vlgmr.msra.gmra.mxu0 %v144_v15  ;;  %238 = vmatpush1.msra.mxu1 %v237_v1  ;;  %v254_v48 = vsub.f32 %v1011_v60, %v253_v29  ;;  %v260_v53 = vsub.f32 %v1015_v61, %v259_v21 }
  0x32   :  { %324 = vmatpush1.msra.mxu0 %v866_v24  ;;  %244 = vmatprep.subr.mxu1 %v243_v38 }
  0x33   :  { %327 = vmatprep.subr.mxu0 %v872_v26  ;;  %250 = vmatpush1.msra.mxu1 %v249_v47  ;;  %v255_v54 = vand.u32 4294901760, %v254_v48  ;;  %v261_v27 = vand.u32 4294901760, %v260_v53 }
  0x34   :  { %330 = vmatpush1.msra.mxu0 %v886_v32  ;;  %399 = vmatprep.mubr.f32.mxu0 %v811_v0 }
  0x35   :  { %333 = vmatprep.subr.mxu0 %v895_v36  ;;  %256 = vmatprep.subr.mxu1 %v255_v54 }
  0x36   :  { %336 = vmatpush1.msra.mxu0 %v908_v41  ;;  %262 = vmatpush1.msra.mxu1 %v261_v27 }
  0x37   :  { %339 = vmatprep.subr.mxu0 %v922_v46  ;;  %297 = vmatmul.mubr.f32.vlgmr.msra.gmra.mxu1 %v958_v7 }
  0x38   :  { %342 = vmatpush1.msra.mxu0 %v942_v58  ;;  %425 = vmatprep.subr.mxu1 %v836_v4 }
  0x39   :  { %345 = vmatprep.subr.mxu0 %v945_v59  ;;  %427 = vmatpush1.msra.mxu1 %v838_v5 }
  0x3a   :  { %348 = vmatpush1.msra.mxu0 %v953_v63  ;;  %429 = vmatprep.subr.mxu1 %v840_v6 }
  0x3b   :  { %351 = vmatprep.subr.mxu0 %v964_v13  ;;  %431 = vmatpush1.msra.mxu1 %v842_v10 }
  0x3c   :  { %354 = vmatpush1.msra.mxu0 %v968_v14  ;;  %433 = vmatprep.subr.mxu1 %v844_v11 }
  0x3d   :  { %357 = vmatprep.subr.mxu0 %v988_v44  ;;  %435 = vmatpush1.msra.mxu1 %v846_v12 }
  0x3e   :  { %360 = vmatpush1.msra.mxu0 %v994_v52  ;;  %437 = vmatprep.subr.mxu1 %v849_v16 }
  0x3f   :  { %363 = vmatprep.subr.mxu0 %v1011_v60  ;;  %439 = vmatpush1.msra.mxu1 %v851_v17 }
  0x40   :  { %366 = vmatpush1.msra.mxu0 %v1015_v61  ;;  %441 = vmatprep.subr.mxu1 %v853_v18 }
  0x41   :  { %402 = vmatmul.mubr.f32.vlgmr.msra.gmra.mxu0 %v978_v39  ;;  %517 = vmatprep.subr.mxu0 %v169_v30 }
  0x42   :  { %443 = vmatpush1.msra.mxu1 %v863_v23  ;;  %521 = vmatpush1.msra.mxu0 %v175_v34 }
  0x43   :  { %445 = vmatprep.subr.mxu1 %v869_v25  ;;  %525 = vmatprep.subr.mxu0 %v181_v35 }
  0x44   :  { %447 = vmatpush1.msra.mxu1 %v883_v31  ;;  %529 = vmatpush1.msra.mxu0 %v187_v40 }
  0x45   :  { %449 = vmatprep.subr.mxu1 %v889_v33  ;;  %533 = vmatprep.subr.mxu0 %v193_v45 }
  0x46   :  { %451 = vmatpush1.msra.mxu1 %v898_v37  ;;  %537 = vmatpush1.msra.mxu0 %v199_v49 }
  0x47   :  { %453 = vmatprep.subr.mxu1 %v911_v42  ;;  %541 = vmatprep.subr.mxu0 %v205_v55 }
  0x48   :  { %455 = vmatpush1.msra.mxu1 %v930_v50  ;;  %488 = vmatprep.mubr.f32.mxu1 %v811_v0 }
  0x49   :  { %545 = vmatpush1.msra.mxu0 %v211_v2  ;;  %492 = vmatmul.mubr.f32.vlgmr.msra.gmra.mxu1 %v142_v51 }
  0x4a   :  { %549 = vmatprep.subr.mxu0 %v217_v3  ;;  %635 = vmatprep.subr.mxu1 %v836_v4 }
  0x4b   :  { %553 = vmatpush1.msra.mxu0 %v223_v9  ;;  %637 = vmatpush1.msra.mxu1 %v838_v5 }
  0x4c   :  { %557 = vmatprep.subr.mxu0 %v229_v22  ;;  %639 = vmatprep.subr.mxu1 %v840_v6 }
  0x4d   :  { %561 = vmatpush1.msra.mxu0 %v235_v43  ;;  %641 = vmatpush1.msra.mxu1 %v842_v10 }
  0x4e   :  { %565 = vmatprep.subr.mxu0 %v241_v56  ;;  %643 = vmatprep.subr.mxu1 %v844_v11 }
  0x4f   :  { %569 = vmatpush1.msra.mxu0 %v247_v57  ;;  %645 = vmatpush1.msra.mxu1 %v846_v12 }
  0x50   :  { %573 = vmatprep.subr.mxu0 %v253_v29  ;;  %647 = vmatprep.subr.mxu1 %v849_v16 }
  0x51   :  { %577 = vmatpush1.msra.mxu0 %v259_v21  ;;  %610 = vmatprep.mubr.f32.mxu0 %v811_v0 }
  0x52   :  { %649 = vmatpush1.msra.mxu1 %v851_v17  ;;  %612 = vmatmul.mubr.f32.vlgmr.msra.gmra.mxu0 %v958_v7 }
  0x53   :  { %651 = vmatprep.subr.mxu1 %v853_v18  ;;  %698 = vmatprep.mubr.f32.mxu1 %v811_v0 }
  0x54   :  { %653 = vmatpush1.msra.mxu1 %v863_v23 }
  0x55   :  { %655 = vmatprep.subr.mxu1 %v869_v25 }
  0x56   :  { %657 = vmatpush1.msra.mxu1 %v883_v31 }
  0x57   :  { %659 = vmatprep.subr.mxu1 %v889_v33 }
  0x58   :  { %661 = vmatpush1.msra.mxu1 %v898_v37 }
  0x59   :  { %663 = vmatprep.subr.mxu1 %v911_v42 }
  0x5a   :  { %665 = vmatpush1.msra.mxu1 %v930_v50 }
  0x5b   :  { %700 = vmatmul.mubr.f32.vlgmr.msra.gmra.mxu1 %v958_v7 }
  0xf1   :  { %v146_v4 = vpop.f32.mrf.mxu0 }
  0xf3   :  { %v148_v5 = vpop.f32.mrf.mxu0 }
  0xf7   :  { %v298_v6 = vpop.f32.mrf.mxu1 }
  0xf8   :  { %v299_v17 = vadd.f32 %v298_v6, %v146_v4 }
  0xf9   :  { %v300_v10 = vpop.f32.mrf.mxu1 }
  0xfa   :  { %v301_v18 = vadd.f32 %v300_v10, %v148_v5 }
 0x101   :  { %v403_v0 = vpop.f32.mrf.mxu0 }
 0x102   :  { %v404_v23 = vadd.f32 %v403_v0, %v299_v17 }
 0x103   :  { %v405_v11 = vpop.f32.mrf.mxu0 }
 0x104   :  { %v406_v24 = vadd.f32 %v405_v11, %v301_v18 }
 0x109   :  { %v493_v12 = vpop.f32.mrf.mxu1 }
 0x10a   :  { %v494_v26 = vadd.f32 %v493_v12, %v404_v23 }
 0x10b   :  { %v495_v19 = vpop.f32.mrf.mxu1 }
 0x10c   :  { %v496_v30 = vadd.f32 %v495_v19, %v406_v24 }
 0x112   :  { %v613_v16 = vpop.f32.mrf.mxu0 }
 0x113   :  { %v614_v32 = vadd.f32 %v613_v16, %v494_v26 }
 0x114   :  { %v615_v25 = vpop.f32.mrf.mxu0 }
 0x115   :  { %v616_v33 = vadd.f32 %v615_v25, %v496_v30 }
 0x11b   :  { %v701_v31 = vpop.f32.mrf.mxu1 }
 0x11c   :  { %v702_v35 = vadd.f32 %v701_v31, %v614_v32 }
 0x11d   :  { %v703_v34 = vpop.f32.mrf.mxu1 }
 0x11e   :  { %v704_v36 = vadd.f32 %v703_v34, %v616_v33 }
 0x120   :  { %v708_v37 = vcombine.low %v702_v35, %v704_v36 }
 0x122   :  { %734 = vst.sshfl [vmem:[#allocation7] sm:$0x33 pattern:$0x76325410] %v708_v37 }
 0x123   :  { %792 = shalt.err (!%p789_p0)
}
 0x124   :  { %727 = dma.vmem_to_hbm [thread:$0]  %s725_s1, 64, %s1125_s2, [#allocation4]  }
 0x125   :  { %805 = dma.done.wait [#allocation4], 64  }
 0x126   :  { %806 = vsyncadd [#allocation4], 4294967232 }
 0x127   :  { %731 = vsyncpa [#allocation3], 1 }
 0x128   :  { %732 = vsyncpa [#allocation6], 1 }
 0x129   :  { %733 = vsyncpa [#allocation4], 1 }

</bundles_post_ra>
